<compile_context>
chip_gen: v7x
topology: tpu7x:2x2x1
jax: 0.10.0
libtpu: 0.0.40
codegen_flags: <defaults>
</compile_context>

<pallas_src>
import functools

import jax
import jax.numpy as jnp
from jax.experimental import pallas as pl
from jax.experimental.pallas import tpu as pltpu

DEFAULT_QUANTILES = (0.02, 0.1, 0.25, 0.5, 0.75, 0.9, 0.98)


def _round_up(x, m):
    return (x + m - 1) // m * m


def _pick_tile(padded, unit, max_tile):
    """Largest multiple of `unit` that divides `padded` and is <= max_tile."""
    best = unit
    t = unit
    while t <= min(padded, max_tile):
        if padded % t == 0:
            best = t
        t += unit
    return best


def _quantile_loss_kernel(t_ref, xt_ref, out_ref, acc_ref, *, quantiles, batch,
                          tb1, tb2, mask_rows, mask_cols):
    i = pl.program_id(0)           # target-tile index (parallel axis)
    j = pl.program_id(1)           # pred-tile index   (reduction axis)
    nj = pl.num_programs(1)

    @pl.when(j == 0)
    def _init():
        acc_ref[...] = jnp.zeros_like(acc_ref)

    t = t_ref[...].astype(jnp.float32)                  # [TB1, 1]
    x = xt_ref[...].astype(jnp.float32)                 # [Q, TB2]
    tb = jnp.broadcast_to(t, (tb1, tb2))                # hoisted broadcast

    # Static unrolled loop over the quantiles: each step is a lane-dense
    # [TB1, TB2] tile of pinball losses, accumulated with plain VPU adds.
    acc_tile = jnp.zeros((tb1, tb2), jnp.float32)
    for qi, q in enumerate(quantiles):
        xq = x[qi:qi + 1, :]                            # [1, TB2]
        err = tb - xq                                   # [TB1, TB2]
        acc_tile = acc_tile + jnp.maximum((q - 1.0) * err, q * err)

    # Zero out contributions from padded rows / columns (compile-time gated).
    valid = None
    if mask_rows:
        rows = jax.lax.broadcasted_iota(jnp.int32, (tb1, tb2), 0) + i * tb1
        valid = rows < batch
    if mask_cols:
        cols = jax.lax.broadcasted_iota(jnp.int32, (tb1, tb2), 1) + j * tb2
        cvalid = cols < batch
        valid = cvalid if valid is None else jnp.logical_and(valid, cvalid)
    if valid is not None:
        acc_tile = jnp.where(valid, acc_tile, 0.0)

    # One cross-lane reduction per tile, then a (1,1) running partial.
    s = jnp.sum(acc_tile, axis=1, keepdims=True)        # [TB1, 1]
    s = jnp.sum(s, axis=0, keepdims=True)               # [1, 1]
    acc_ref[...] += s

    # Emit one lane-dense partial per B1 tile (enables "parallel" on axis 0).
    @pl.when(j == nj - 1)
    def _finalize():
        out_ref[...] = jnp.broadcast_to(acc_ref[...], out_ref.shape)


def quantile_loss(pred, target, quantiles=DEFAULT_QUANTILES):
    """pred: [B, Q], target: [B] (any dtype castable to f32). Returns scalar f32."""
    quantiles = tuple(float(q) for q in quantiles)
    B, Q = pred.shape
    assert Q == len(quantiles), (
        f"pred_dim must equal number of quantiles ({len(quantiles)}), got {Q}")

    t = target.reshape(-1, 1)        # [B, 1]  (cast happens inside the kernel)
    xt = pred.T                      # [Q, B]  (lane-dense batch axis)

    b1p = _round_up(B, 8)
    b2p = _round_up(B, 128)
    tb1 = _pick_tile(b1p, 8, 256)
    tb2 = _pick_tile(b2p, 128, 512)
    ni = b1p // tb1
    nj = b2p // tb2

    if b1p != B:
        t = jnp.pad(t, ((0, b1p - B), (0, 0)))
    if b2p != B:
        xt = jnp.pad(xt, ((0, 0), (0, b2p - B)))

    kernel = functools.partial(
        _quantile_loss_kernel, quantiles=quantiles, batch=B,
        tb1=tb1, tb2=tb2, mask_rows=(b1p != B), mask_cols=(b2p != B))

    partials = pl.pallas_call(
        kernel,
        out_shape=jax.ShapeDtypeStruct((1, 128 * ni), jnp.float32),
        grid_spec=pltpu.PrefetchScalarGridSpec(
            num_scalar_prefetch=0,
            grid=(ni, nj),
            in_specs=[
                pl.BlockSpec((tb1, 1), lambda i, j: (i, 0)),   # target tile
                pl.BlockSpec((Q, tb2), lambda i, j: (0, j)),   # pred^T tile
            ],
            out_specs=pl.BlockSpec((1, 128), lambda i, j: (0, i)),
            scratch_shapes=[pltpu.VMEM((1, 1), jnp.float32)],
        ),
        compiler_params=pltpu.CompilerParams(
            dimension_semantics=("parallel", "arbitrary")),
    )(t, xt)

    # Tiny final reduction over per-B1-tile partials in the wrapper.
    total = jnp.sum(partials[0].reshape(ni, 128)[:, 0])
    return total / jnp.float32(B * B * Q)


def _reference_quantile_loss(pred, target, quantiles=DEFAULT_QUANTILES):
    """Pure-JAX replica of the PyTorch forward (including the broadcast)."""
    t = target.reshape(-1, 1).astype(jnp.float32)              # [B, 1]
    losses = []
    for i, q in enumerate(quantiles):
        errors = t - pred[..., i].astype(jnp.float32)          # [B, B]
        losses.append(jnp.maximum((q - 1.0) * errors, q * errors)[..., None])
    loss = jnp.concatenate(losses, axis=2)                     # [B, B, Q]
    return jnp.mean(loss)


if __name__ == "__main__":
    B = 8
    Q = len(DEFAULT_QUANTILES)

    key = jax.random.PRNGKey(0)
    k1, k2 = jax.random.split(key)
    pred = jax.random.normal(k1, (B, Q), dtype=jnp.float32)
    target = jax.random.normal(k2, (B,), dtype=jnp.float32)

    out = quantile_loss(pred, target)
    out = jax.block_until_ready(out)

    ref = _reference_quantile_loss(pred, target)
    assert jnp.allclose(out, ref, atol=1e-5, rtol=1e-5), (out, ref)

    print("KERNEL_OK")
</pallas_src>

<mosaic_0001>
module attributes {stable_mosaic.version = 11 : i64} {
  func.func @_quantile_loss_kernel(%arg0: i32, %arg1: i32, %arg2: memref<8x1xf32, #tpu.memory_space<vmem>>, %arg3: memref<7x128xf32, #tpu.memory_space<vmem>>, %arg4: memref<1x128xf32, #tpu.memory_space<vmem>>, %arg5: memref<1x1xf32, #tpu.memory_space<vmem>>) attributes {dimension_semantics = [#tpu.dimension_semantics<parallel>, #tpu.dimension_semantics<arbitrary>], iteration_bounds = array<i64: 1, 1>, scalar_prefetch = 0 : i64, scratch_operands = 1 : i64, tpu.core_type = #tpu.core_type<tc>, window_params = [{transform_indices = @transform_0, window_bounds = array<i64: 8, 1>}, {transform_indices = @transform_1, window_bounds = array<i64: 7, 128>}, {transform_indices = @transform_2, window_bounds = array<i64: 1, 128>}]} {
    %c0_i32 = arith.constant 0 : i32
    %0 = arith.cmpi eq, %arg1, %c0_i32 : i32
    %1 = arith.extui %0 : i1 to i32
    %c0_i32_0 = arith.constant 0 : i32
    %2 = arith.cmpi ne, %1, %c0_i32_0 : i32
    scf.if %2 {
      %cst_27 = arith.constant 0.000000e+00 : f32
      %89 = vector.broadcast %cst_27 : f32 to vector<1x1xf32>
      %c0_28 = arith.constant 0 : index
      %c0_29 = arith.constant 0 : index
      %90 = vector.load %arg5[%c0_28, %c0_29] : memref<1x1xf32, #tpu.memory_space<vmem>>, vector<1x1xf32>
      tpu.vector_store %arg5[%c0_28, %c0_29], %89 {strides = array<i32>} : memref<1x1xf32, #tpu.memory_space<vmem>>, vector<1x1xf32>,
    } else {
    }
    %c0 = arith.constant 0 : index
    %c0_1 = arith.constant 0 : index
    %3 = vector.load %arg2[%c0, %c0_1] : memref<8x1xf32, #tpu.memory_space<vmem>>, vector<8x1xf32>
    %c0_2 = arith.constant 0 : index
    %c0_3 = arith.constant 0 : index
    %4 = vector.load %arg3[%c0_2, %c0_3] : memref<7x128xf32, #tpu.memory_space<vmem>>, vector<7x128xf32>
    %5 = vector.shape_cast %3 : vector<8x1xf32> to vector<8x1xf32>
    %6 = vector.broadcast %5 : vector<8x1xf32> to vector<8x128xf32>
    %cst = arith.constant 0.000000e+00 : f32
    %7 = vector.broadcast %cst : f32 to vector<8x128xf32>
    %8 = vector.extract_strided_slice %4 {offsets = [0, 0], sizes = [1, 128], strides = [1, 1]} : vector<7x128xf32> to vector<1x128xf32>
    %9 = vector.broadcast %8 : vector<1x128xf32> to vector<8x128xf32>
    %10 = arith.subf %6, %9 : vector<8x128xf32>
    %cst_4 = arith.constant -9.800000e-01 : f32
    %11 = vector.broadcast %cst_4 : f32 to vector<8x128xf32>
    %12 = arith.mulf %11, %10 : vector<8x128xf32>
    %cst_5 = arith.constant 2.000000e-02 : f32
    %13 = vector.broadcast %cst_5 : f32 to vector<8x128xf32>
    %14 = arith.mulf %13, %10 : vector<8x128xf32>
    %15 = arith.maximumf %12, %14 : vector<8x128xf32>
    %16 = arith.addf %7, %15 : vector<8x128xf32>
    %17 = vector.extract_strided_slice %4 {offsets = [1, 0], sizes = [1, 128], strides = [1, 1]} : vector<7x128xf32> to vector<1x128xf32>
    %18 = vector.broadcast %17 : vector<1x128xf32> to vector<8x128xf32>
    %19 = arith.subf %6, %18 : vector<8x128xf32>
    %cst_6 = arith.constant -0.899999976 : f32
    %20 = vector.broadcast %cst_6 : f32 to vector<8x128xf32>
    %21 = arith.mulf %20, %19 : vector<8x128xf32>
    %cst_7 = arith.constant 1.000000e-01 : f32
    %22 = vector.broadcast %cst_7 : f32 to vector<8x128xf32>
    %23 = arith.mulf %22, %19 : vector<8x128xf32>
    %24 = arith.maximumf %21, %23 : vector<8x128xf32>
    %25 = arith.addf %16, %24 : vector<8x128xf32>
    %26 = vector.extract_strided_slice %4 {offsets = [2, 0], sizes = [1, 128], strides = [1, 1]} : vector<7x128xf32> to vector<1x128xf32>
    %27 = vector.broadcast %26 : vector<1x128xf32> to vector<8x128xf32>
    %28 = arith.subf %6, %27 : vector<8x128xf32>
    %cst_8 = arith.constant -7.500000e-01 : f32
    %29 = vector.broadcast %cst_8 : f32 to vector<8x128xf32>
    %30 = arith.mulf %29, %28 : vector<8x128xf32>
    %cst_9 = arith.constant 2.500000e-01 : f32
    %31 = vector.broadcast %cst_9 : f32 to vector<8x128xf32>
    %32 = arith.mulf %31, %28 : vector<8x128xf32>
    %33 = arith.maximumf %30, %32 : vector<8x128xf32>
    %34 = arith.addf %25, %33 : vector<8x128xf32>
    %35 = vector.extract_strided_slice %4 {offsets = [3, 0], sizes = [1, 128], strides = [1, 1]} : vector<7x128xf32> to vector<1x128xf32>
    %36 = vector.broadcast %35 : vector<1x128xf32> to vector<8x128xf32>
    %37 = arith.subf %6, %36 : vector<8x128xf32>
    %cst_10 = arith.constant -5.000000e-01 : f32
    %38 = vector.broadcast %cst_10 : f32 to vector<8x128xf32>
    %39 = arith.mulf %38, %37 : vector<8x128xf32>
    %cst_11 = arith.constant 5.000000e-01 : f32
    %40 = vector.broadcast %cst_11 : f32 to vector<8x128xf32>
    %41 = arith.mulf %40, %37 : vector<8x128xf32>
    %42 = arith.maximumf %39, %41 : vector<8x128xf32>
    %43 = arith.addf %34, %42 : vector<8x128xf32>
    %44 = vector.extract_strided_slice %4 {offsets = [4, 0], sizes = [1, 128], strides = [1, 1]} : vector<7x128xf32> to vector<1x128xf32>
    %45 = vector.broadcast %44 : vector<1x128xf32> to vector<8x128xf32>
    %46 = arith.subf %6, %45 : vector<8x128xf32>
    %cst_12 = arith.constant -2.500000e-01 : f32
    %47 = vector.broadcast %cst_12 : f32 to vector<8x128xf32>
    %48 = arith.mulf %47, %46 : vector<8x128xf32>
    %cst_13 = arith.constant 7.500000e-01 : f32
    %49 = vector.broadcast %cst_13 : f32 to vector<8x128xf32>
    %50 = arith.mulf %49, %46 : vector<8x128xf32>
    %51 = arith.maximumf %48, %50 : vector<8x128xf32>
    %52 = arith.addf %43, %51 : vector<8x128xf32>
    %53 = vector.extract_strided_slice %4 {offsets = [5, 0], sizes = [1, 128], strides = [1, 1]} : vector<7x128xf32> to vector<1x128xf32>
    %54 = vector.broadcast %53 : vector<1x128xf32> to vector<8x128xf32>
    %55 = arith.subf %6, %54 : vector<8x128xf32>
    %cst_14 = arith.constant -1.000000e-01 : f32
    %56 = vector.broadcast %cst_14 : f32 to vector<8x128xf32>
    %57 = arith.mulf %56, %55 : vector<8x128xf32>
    %cst_15 = arith.constant 0.899999976 : f32
    %58 = vector.broadcast %cst_15 : f32 to vector<8x128xf32>
    %59 = arith.mulf %58, %55 : vector<8x128xf32>
    %60 = arith.maximumf %57, %59 : vector<8x128xf32>
    %61 = arith.addf %52, %60 : vector<8x128xf32>
    %62 = vector.extract_strided_slice %4 {offsets = [6, 0], sizes = [1, 128], strides = [1, 1]} : vector<7x128xf32> to vector<1x128xf32>
    %63 = vector.broadcast %62 : vector<1x128xf32> to vector<8x128xf32>
    %64 = arith.subf %6, %63 : vector<8x128xf32>
    %cst_16 = arith.constant -2.000000e-02 : f32
    %65 = vector.broadcast %cst_16 : f32 to vector<8x128xf32>
    %66 = arith.mulf %65, %64 : vector<8x128xf32>
    %cst_17 = arith.constant 9.800000e-01 : f32
    %67 = vector.broadcast %cst_17 : f32 to vector<8x128xf32>
    %68 = arith.mulf %67, %64 : vector<8x128xf32>
    %69 = arith.maximumf %66, %68 : vector<8x128xf32>
    %70 = arith.addf %61, %69 : vector<8x128xf32>
    %71 = tpu.iota {dimensions = array<i32: 1>} : vector<8x128xi32>
    %c128_i32 = arith.constant 128 : i32
    %72 = arith.muli %arg1, %c128_i32 : i32
    %73 = vector.broadcast %72 : i32 to vector<8x128xi32>
    %74 = arith.addi %71, %73 : vector<8x128xi32>
    %c8_i32 = arith.constant 8 : i32
    %75 = vector.broadcast %c8_i32 : i32 to vector<8x128xi32>
    %76 = arith.cmpi slt, %74, %75 : vector<8x128xi32>
    %cst_18 = arith.constant 0.000000e+00 : f32
    %77 = vector.broadcast %cst_18 : f32 to vector<8x128xf32>
    %78 = arith.select %76, %70, %77 : vector<8x128xi1>, vector<8x128xf32>
    %cst_19 = arith.constant dense<0.000000e+00> : vector<8xf32>
    %79 = vector.multi_reduction <add>, %78, %cst_19 [1] : vector<8x128xf32> to vector<8xf32>
    %80 = vector.shape_cast %79 : vector<8xf32> to vector<8x1xf32>
    %cst_20 = arith.constant dense<0.000000e+00> : vector<1xf32>
    %81 = vector.multi_reduction <add>, %80, %cst_20 [0] : vector<8x1xf32> to vector<1xf32>
    %82 = vector.shape_cast %81 : vector<1xf32> to vector<1x1xf32>
    %c0_21 = arith.constant 0 : index
    %c0_22 = arith.constant 0 : index
    %83 = vector.load %arg5[%c0_21, %c0_22] : memref<1x1xf32, #tpu.memory_space<vmem>>, vector<1x1xf32>
    %84 = arith.addf %83, %82 : vector<1x1xf32>
    %c0_23 = arith.constant 0 : index
    %c0_24 = arith.constant 0 : index
    %85 = vector.load %arg5[%c0_23, %c0_24] : memref<1x1xf32, #tpu.memory_space<vmem>>, vector<1x1xf32>
    tpu.vector_store %arg5[%c0_23, %c0_24], %84 {strides = array<i32>} : memref<1x1xf32, #tpu.memory_space<vmem>>, vector<1x1xf32>,
    %c0_i32_25 = arith.constant 0 : i32
    %86 = arith.cmpi eq, %arg1, %c0_i32_25 : i32
    %87 = arith.extui %86 : i1 to i32
    %c0_i32_26 = arith.constant 0 : i32
    %88 = arith.cmpi ne, %87, %c0_i32_26 : i32
    scf.if %88 {
      %c0_27 = arith.constant 0 : index
      %c0_28 = arith.constant 0 : index
      %89 = vector.load %arg5[%c0_27, %c0_28] : memref<1x1xf32, #tpu.memory_space<vmem>>, vector<1x1xf32>
      %90 = vector.shape_cast %89 : vector<1x1xf32> to vector<1x1xf32>
      %91 = vector.broadcast %90 : vector<1x1xf32> to vector<1x128xf32>
      %c0_29 = arith.constant 0 : index
      %c0_30 = arith.constant 0 : index
      %92 = vector.load %arg4[%c0_29, %c0_30] : memref<1x128xf32, #tpu.memory_space<vmem>>, vector<1x128xf32>
      tpu.vector_store %arg4[%c0_29, %c0_30], %91 {strides = array<i32>} : memref<1x128xf32, #tpu.memory_space<vmem>>, vector<1x128xf32>,
    } else {
    }
    return
  }
  func.func @transform_0(%arg0: i32, %arg1: i32) -> (i32, i32) {
    %c0_i32 = arith.constant 0 : i32
    %c0_i32_0 = arith.constant 0 : i32
    return %arg0, %c0_i32 : i32, i32
  }
  func.func @transform_1(%arg0: i32, %arg1: i32) -> (i32, i32) {
    %c0_i32 = arith.constant 0 : i32
    %c0_i32_0 = arith.constant 0 : i32
    return %c0_i32, %arg1 : i32, i32
  }
  func.func @transform_2(%arg0: i32, %arg1: i32) -> (i32, i32) {
    %c0_i32 = arith.constant 0 : i32
    %c0_i32_0 = arith.constant 0 : i32
    return %c0_i32, %arg0 : i32, i32
  }
}

</mosaic_0001>

<bundles_post_ra>
// kernel: tpu_custom_call.1
= control target key start
LH: loop header
LB: loop body
LE: loop exit
PB: predicated region body
PF: predicated region fallthrough
CT: control target
= control target key end

     0   :  { %s213_s0 = inlined_call_operand.vmem [shape: f32[8,1], index: 0, kind: input, shape index: {}]   ;;  %s214_s1 = inlined_call_operand.vmem [shape: f32[7,128], index: 1, kind: input, shape index: {}]   ;;  %s215_s2 = inlined_call_operand.hbm [shape: f32[1,128], index: 2, kind: output, shape index: {}]  }
   0x1   :  { %v18_v0 = vld [vmem:[%s213_s0] sm:$0xff] }
   0x2   :  { %7 = vsyncpa [#allocation4], 0  ;;  %v164_v1 = vmov 0   ;;  %v25_v2 = vlaneseq  ;;  %v19_v7 = vld [vmem:[%s214_s1] sm:$0x7f]  ;;  %vm16_vm1 = vcmask 0  }
   0x3   :  { %138 = vset.pattern.permute.xlu0 %v164_v1  ;;  %139 = vset.pattern.permute.xlu1 %v164_v1  ;;  %v165_v56 = vmov 0.0   ;;  %s166_s0 = smov [#allocation3]  }
   0x4   :  { %22 = vperm.xlu0 %138, %v18_v0   ;;  %v185_v3 = vshrl.u32 %v25_v2, 7  ;;  %v89_v49 = vand.u32 127, %v25_v2  ;;  %17 = vst.msk [vmem:[#allocation2] sm:$0x1] %vm16_vm1, %v165_v56  ;;  %s127_s1 = sshll.u32 %s166_s0, 4  ;;  %s128_s1 = int_to_ptr.vmem [resolvable:$true] %s127_s1 }
   0x5   :  { %s140_s13 = scalar_lea.vmem %s128_s1, 16  ;;  %s144_s14 = scalar_lea.vmem %s128_s1, 32 }
   0x6   :  { %v27_v4 = vsub.s32 0, %v185_v3  ;;  %v36_v5 = vsub.s32 1, %v185_v3  ;;  %v45_v6 = vsub.s32 2, %v185_v3  ;;  %v54_v8 = vsub.s32 3, %v185_v3  ;;  %p141_p0 = scmp.ne.s32.totalorder %s128_s1, %s140_s13  ;;  %p145_p1 = scmp.lt.s32.totalorder %s128_s1, %s128_s1 }
   0x7   :  { %v63_v9 = vsub.s32 4, %v185_v3  ;;  %v72_v14 = vsub.s32 5, %v185_v3  ;;  %v81_v15 = vsub.s32 6, %v185_v3  ;;  %vm93_vm0 = vcmp.lt.s32.totalorder %v89_v49, 8  ;;  %p146_p2 = scmp.lt.s32.totalorder %s144_s14, %s140_s13 }
   0x8   :  { %v28_v10 = vrot.slane %v19_v7, %v27_v4  ;;  %v37_v11 = vrot.slane %v19_v7, %v36_v5  ;;  %v46_v12 = vrot.slane %v19_v7, %v45_v6  ;;  %v55_v13 = vrot.slane %v19_v7, %v54_v8 }
   0x9   :  { %v64_v17 = vrot.slane %v19_v7, %v63_v9  ;;  %v73_v22 = vrot.slane %v19_v7, %v72_v14  ;;  %v82_v26 = vrot.slane %v19_v7, %v81_v15  ;;  %p147_p3 = por %p146_p2, %p145_p1 }
   0xb   :  { %v103_v63 = vld [vmem:[#allocation2] sm:$0x1]  ;;  %p148_p4 = pnand %p147_p3, %p141_p0 }
  0x83   :  { %v23_v16 = vpop.permute.xlu0 %22 }
  0x84   :  { %v29_v18 = vsub.f32 %v23_v16, %v28_v10  ;;  %v38_v19 = vsub.f32 %v23_v16, %v37_v11  ;;  %v47_v20 = vsub.f32 %v23_v16, %v46_v12  ;;  %v56_v21 = vsub.f32 %v23_v16, %v55_v13 }
  0x85   :  { %v65_v30 = vsub.f32 %v23_v16, %v64_v17  ;;  %v74_v35 = vsub.f32 %v23_v16, %v73_v22  ;;  %v83_v36 = vsub.f32 %v23_v16, %v82_v26 }
  0x86   :  { %v30_v23 = vmul.f32 -0.98, %v29_v18  ;;  %v31_v24 = vmul.f32 0.02, %v29_v18  ;;  %v39_v25 = vmul.f32 -0.9, %v38_v19 }
  0x87   :  { %v40_v27 = vmul.f32 0.1, %v38_v19  ;;  %v48_v28 = vmul.f32 -0.75, %v47_v20  ;;  %v49_v29 = vmul.f32 0.25, %v47_v20  ;;  %v57_v33 = vmul.f32 -0.5, %v56_v21 }
  0x88   :  { %v32_v31 = vmax.f32 %v30_v23, %v31_v24  ;;  %v58_v34 = vmul.f32 0.5, %v56_v21  ;;  %v66_v39 = vmul.f32 -0.25, %v65_v30  ;;  %v67_v40 = vmul.f32 0.75, %v65_v30 }
  0x89   :  { %v41_v32 = vmax.f32 %v39_v25, %v40_v27  ;;  %v50_v38 = vmax.f32 %v48_v28, %v49_v29  ;;  %v75_v43 = vmul.f32 -0.1, %v74_v35  ;;  %v76_v44 = vmul.f32 0.9, %v74_v35 }
  0x8a   :  { %v59_v42 = vmax.f32 %v57_v33, %v58_v34  ;;  %v68_v46 = vmax.f32 %v66_v39, %v67_v40  ;;  %v84_v47 = vmul.f32 -0.02, %v83_v36  ;;  %v85_v48 = vmul.f32 0.98, %v83_v36 }
  0x8b   :  { %v42_v37 = vadd.f32 %v41_v32, %v32_v31  ;;  %v77_v51 = vmax.f32 %v75_v43, %v76_v44 }
  0x8c   :  { %v86_v53 = vmax.f32 %v84_v47, %v85_v48 }
  0x8d   :  { %v51_v41 = vadd.f32 %v50_v38, %v42_v37 }
  0x8f   :  { %v60_v45 = vadd.f32 %v59_v42, %v51_v41 }
  0x91   :  { %v69_v50 = vadd.f32 %v68_v46, %v60_v45 }
  0x93   :  { %v78_v52 = vadd.f32 %v77_v51, %v69_v50 }
  0x95   :  { %v87_v54 = vadd.f32 %v86_v53, %v78_v52 }
  0x97   :  { %v94_v55 = vsel %vm93_vm0, %v87_v54, 0.0 }
  0x98   :  { %95 = vadd.xlane.f32.xlu0 %v94_v55 }
 0x125   :  { %v96_v57 = vpop.xlane.xlu0 %95 }
 0x126   :  { %v97_v58 = vrot.slane %v96_v57, 4 }
 0x128   :  { %v98_v59 = vadd.f32 %v97_v58, %v96_v57 }
 0x12a   :  { %v99_v60 = vrot.slane %v98_v59, 2 }
 0x12c   :  { %v100_v61 = vadd.f32 %v99_v60, %v98_v59 }
 0x12e   :  { %v101_v62 = vrot.slane %v100_v61, 1 }
 0x130   :  { %v102_v0 = vadd.f32 %v101_v62, %v100_v61 }
 0x132   :  { %v104_v1 = vadd.f32 %v103_v63, %v102_v0 }
 0x134   :  { %106 = vst.msk [vmem:[#allocation2] sm:$0x1] %vm16_vm1, %v104_v1 }
 0x13b   :  { %v110_v2 = vld [vmem:[#allocation2] sm:$0x1] }
 0x13c   :  { %113 = vperm.xlu1 %139, %v110_v2  }
 0x1bb   :  { %v114_v5 = vpop.permute.xlu1 %113 }
 0x1bc   :  { %v119_v6 = vrot.slane %v114_v5, %v27_v4 }
 0x1be   :  { %120 = vst [vmem:[#allocation3] sm:$0x1] %v119_v6 }
 0x1bf   :  { %151 = shalt.err (!%p148_p4)
}
 0x1c0   :  { %s152_s17 = scalar_lea.hbm %s215_s2, 16 }
 0x1c1   :  { %p153_p5 = scmp.ne.s32.totalorder %s215_s2, %s152_s17  ;;  %p156_p6 = scmp.lt.u32.totalorder %s152_s17, %s215_s2 }
 0x1c3   :  { %p158_p7 = pnand %p156_p6, %p153_p5 }
 0x1c5   :  { %161 = shalt.err (!%p158_p7)
}
 0x1c6   :  { %130 = dma.vmem_to_hbm [thread:$0]  %s128_s1, 16, %s215_s2, [#allocation4]  }
 0x1c7   :  { %162 = dma.done.wait [#allocation4], 16  }
 0x1c8   :  { %163 = vsyncadd [#allocation4], 4294967280 }
 0x1c9   :  { %134 = vsyncpa [#allocation4], 1 }

</bundles_post_ra>
